<compile_context>
chip_gen: v7x
topology: tpu7x:2x2x1
jax: 0.10.0
libtpu: 0.0.40
codegen_flags: <defaults>
</compile_context>

<pallas_src>
import math
import functools

import jax
import jax.numpy as jnp
from jax.experimental import pallas as pl
from jax.experimental.pallas import tpu as pltpu


# ----------------------------------------------------------------------------
# Projection kernel (runs once over node-row tiles):
#   [Q | K*inv_scale] = x @ Wqk_packed         -> bf16 [N, 2*hd]  (split outputs)
#   [head-res | main-res] = x @ Wres_packed+b  -> f32  [N, 2*hd]
# ----------------------------------------------------------------------------
def proj_kernel(x_ref, wqk_ref, wres_ref, bres_ref, q_ref, k_ref, res_ref, *, hd):
    x = x_ref[...]                                        # [T, Fin] bf16
    qk = jnp.dot(x, wqk_ref[...], preferred_element_type=jnp.float32)   # [T, 2*hd]
    q_ref[...] = qk[:, :hd].astype(jnp.bfloat16)
    k_ref[...] = qk[:, hd:].astype(jnp.bfloat16)          # K already scaled by 1/sqrt(hid)
    res = jnp.dot(x, wres_ref[...], preferred_element_type=jnp.float32)
    res_ref[...] = res + bres_ref[...]


# ----------------------------------------------------------------------------
# Fused attention + LayerNorm + Swish + residual + output-Linear kernel.
# Grid = (dst-row tiles [parallel], src/key tiles [arbitrary]).
# Online softmax per head; normalization after aggregation; finalize at last src tile.
# ----------------------------------------------------------------------------
def attn_kernel(q_ref, k_ref, res_ref, adjt_ref, gamma_ref, beta_ref,
                wout_ref, bout_ref, out_ref, acc_ref, m_ref, l_ref,
                *, num_heads, hidden):
    hd = num_heads * hidden
    k_step = pl.program_id(1)
    n_steps = pl.num_programs(1)

    @pl.when(k_step == 0)
    def _():
        # -1e29 is the clamp floor: masked scores (-1e30) then give exp(<= -9e29) == 0,
        # so fully-masked (isolated) dst rows aggregate to exactly 0 (index_add semantics).
        m_ref[...] = jnp.full_like(m_ref, -1e29)
        l_ref[...] = jnp.zeros_like(l_ref)
        acc_ref[...] = jnp.zeros_like(acc_ref)

    mask = adjt_ref[...] != 0                             # [T, S] adjT[dst, src] int8 -> bool
    k_rows = k_ref[...]                                   # [T, hd] bf16 (pre-scaled)
    q_tile = q_ref[...]                                   # [S, hd] bf16

    for h in range(num_heads):                            # static unroll over heads
        c0, c1 = h * hidden, (h + 1) * hidden
        kh = k_rows[:, c0:c1]                             # [T, hid]
        qh = q_tile[:, c0:c1]                             # [S, hid]
        # scores directly in [dst, src] order (no transpose anywhere)
        s = jax.lax.dot_general(kh, qh, (((1,), (1,)), ((), ())),
                                preferred_element_type=jnp.float32)     # [T, S] f32
        masked = jnp.where(mask, s, -1e30)

        m_old = m_ref[h]                                  # [T, 1]
        m_new = jnp.maximum(m_old, jnp.max(masked, axis=-1, keepdims=True))
        a = jnp.exp(m_old - m_new)                        # rescale factor in (0, 1]
        e = jnp.exp(masked - m_new)                       # masked entries -> exactly 0
        l_ref[h] = a * l_ref[h] + jnp.sum(e, axis=-1, keepdims=True)
        m_ref[h] = m_new
        # un-normalized accumulation (normalize after aggregation, per perf review)
        acc_ref[:, c0:c1] = a * acc_ref[:, c0:c1] + jnp.dot(
            e.astype(jnp.bfloat16), qh, preferred_element_type=jnp.float32)

    @pl.when(k_step == n_steps - 1)
    def _():
        # per-head post-aggregation normalization, written back into the slab
        for h in range(num_heads):
            c0, c1 = h * hidden, (h + 1) * hidden
            inv = pl.reciprocal(jnp.maximum(l_ref[h], 1e-30), approx=True)   # [T, 1]
            acc_ref[:, c0:c1] = acc_ref[:, c0:c1] * inv

        res = res_ref[...]                                # [T, 2*hd] f32
        y = acc_ref[...] + res[:, :hd]                    # attention + per-head residual

        # LayerNorm over H*hid (lane-dense, f32)
        mean = jnp.mean(y, axis=-1, keepdims=True)
        var = jnp.mean((y - mean) * (y - mean), axis=-1, keepdims=True)
        yn = (y - mean) * jax.lax.rsqrt(var + 1e-5)
        yn = yn * gamma_ref[...] + beta_ref[...]

        # dropout (eval mode) -> identity ; Swish ; main residual ; output Linear
        ys = yn * jax.nn.sigmoid(yn)
        z = ys + res[:, hd:]
        out = jnp.dot(z, wout_ref[...], preferred_element_type=jnp.float32) + bout_ref[...]
        out_ref[...] = out.astype(out_ref.dtype)


# ----------------------------------------------------------------------------
# Tiling helpers
# ----------------------------------------------------------------------------
def _pick_row_tile(n):
    # prefer >= 2 dst tiles (megacore / v7x dual TC), tile multiple of 8, <= 256
    for t in (256, 128, 64, 32, 16, 8):
        if 2 * t <= n and n % t == 0:
            return t
    return n   # TODO(synk): pad dst rows for non-divisible N instead of a single full tile


def _pick_src_tile(n):
    for t in (512, 256, 128):
        if n % t == 0:
            return t
    return n


# ----------------------------------------------------------------------------
# Wrapper: packs parameters into pre-transposed lane-dense slabs, runs the
# projection kernel once, then the tiled attention kernel.
# ----------------------------------------------------------------------------
def multi_head_dot_gat(x, adj_t_i8, params, *, num_heads, hidden, out_features):
    n, fin = x.shape
    hd = num_heads * hidden
    out_pad = max(128, ((out_features + 127) // 128) * 128)
    inv_scale = 1.0 / math.sqrt(hidden)

    # ---- parameter packing (layout only, done once) ----
    def pack_heads(w):   # [H, hid, Fin] -> [Fin, H*hid]
        return jnp.transpose(w, (2, 0, 1)).reshape(fin, hd)

    wq = pack_heads(params["wq"])
    wk = pack_heads(params["wk"]) * inv_scale            # fold 1/sqrt(hid) into K
    wqk = jnp.concatenate([wq, wk], axis=1).astype(jnp.bfloat16)              # [Fin, 2*hd]
    wres = jnp.concatenate([pack_heads(params["wr_w"]), params["w_res"].T],
                           axis=1).astype(jnp.bfloat16)                       # [Fin, 2*hd]
    bres = jnp.concatenate([params["wr_b"].reshape(hd),
                            params["b_res"].reshape(hd)]).reshape(1, 2 * hd)
    gamma = params["gamma"].reshape(1, hd).astype(jnp.float32)
    beta = params["beta"].reshape(1, hd).astype(jnp.float32)
    wout = jnp.zeros((hd, out_pad), jnp.float32).at[:, :out_features].set(params["w_out"].T)
    bout = jnp.zeros((1, out_pad), jnp.float32).at[:, :out_features].set(
        params["b_out"].reshape(1, out_features))

    x_bf = x.astype(jnp.bfloat16)

    # ---- projection (runs once; Q no longer recomputed per dst tile) ----
    proj_tile = 256 if (n > 256 and n % 256 == 0) else n
    q_all, k_all, res_all = pl.pallas_call(
        functools.partial(proj_kernel, hd=hd),
        out_shape=(jax.ShapeDtypeStruct((n, hd), jnp.bfloat16),
                   jax.ShapeDtypeStruct((n, hd), jnp.bfloat16),
                   jax.ShapeDtypeStruct((n, 2 * hd), jnp.float32)),
        grid_spec=pltpu.PrefetchScalarGridSpec(
            num_scalar_prefetch=0,
            grid=(n // proj_tile,),
            in_specs=[
                pl.BlockSpec((proj_tile, fin), lambda i: (i, 0)),
                pl.BlockSpec((fin, 2 * hd), lambda i: (0, 0)),
                pl.BlockSpec((fin, 2 * hd), lambda i: (0, 0)),
                pl.BlockSpec((1, 2 * hd), lambda i: (0, 0)),
            ],
            out_specs=(pl.BlockSpec((proj_tile, hd), lambda i: (i, 0)),
                       pl.BlockSpec((proj_tile, hd), lambda i: (i, 0)),
                       pl.BlockSpec((proj_tile, 2 * hd), lambda i: (i, 0))),
        ),
        compiler_params=pltpu.CompilerParams(dimension_semantics=("parallel",)),
    )(x_bf, wqk, wres, bres)

    # ---- attention + LN + Swish + output, tiled (dst parallel x src arbitrary) ----
    row_tile = _pick_row_tile(n)
    src_tile = _pick_src_tile(n)
    grid = (n // row_tile, n // src_tile)
    n_dst = grid[0]

    bytes_per_step = (
        2 * (src_tile * hd * 2)                     # Q tile (bf16, double-buffered)
        + 2 * (row_tile * hd * 2)                   # K rows (bf16)
        + 2 * (row_tile * 2 * hd * 4)               # residual slab (f32)
        + 2 * (row_tile * src_tile)                 # adjacency (int8)
        + 2 * (2 * hd * 4)                          # gamma, beta
        + 2 * (hd * out_pad * 4 + out_pad * 4)      # Wout, bout
        + 2 * (row_tile * out_pad * 4)              # output block
        + row_tile * hd * 4                         # acc scratch
        + 2 * num_heads * row_tile * 128 * 4        # m / l scratch (lane-padded)
    )
    vmem_limit = int(min(max(2 * bytes_per_step, 32 * 2 ** 20), 56 * 2 ** 20))

    cost = pl.CostEstimate(
        flops=int(4 * num_heads * n * n * hidden        # scores + aggregation
                  + 2 * n * hd * out_pad                # output projection
                  + 10 * n * hd),                       # LN / swish / residual adds
        transcendentals=int(num_heads * n * n + n * hd),
        bytes_accessed=int(n * hd * 2 * (n_dst + 1)     # Q re-streamed per dst tile + K once
                           + n * 2 * hd * 4 + n * n
                           + n * out_pad * 4
                           + n_dst * (hd * out_pad + 2 * hd + 2 * out_pad) * 4),
    )

    out = pl.pallas_call(
        functools.partial(attn_kernel, num_heads=num_heads, hidden=hidden),
        out_shape=jax.ShapeDtypeStruct((n, out_pad), jnp.float32),
        grid_spec=pltpu.PrefetchScalarGridSpec(
            num_scalar_prefetch=0,
            grid=grid,
            in_specs=[
                pl.BlockSpec((src_tile, hd), lambda i, k: (k, 0)),        # Q (src tile)
                pl.BlockSpec((row_tile, hd), lambda i, k: (i, 0)),        # K (dst rows, pre-scaled)
                pl.BlockSpec((row_tile, 2 * hd), lambda i, k: (i, 0)),    # residual slab
                pl.BlockSpec((row_tile, src_tile), lambda i, k: (i, k)),  # adjT int8 [dst, src]
                pl.BlockSpec((1, hd), lambda i, k: (0, 0)),               # gamma
                pl.BlockSpec((1, hd), lambda i, k: (0, 0)),               # beta
                pl.BlockSpec((hd, out_pad), lambda i, k: (0, 0)),         # Wout^T (padded)
                pl.BlockSpec((1, out_pad), lambda i, k: (0, 0)),          # bout (padded)
            ],
            out_specs=pl.BlockSpec((row_tile, out_pad), lambda i, k: (i, 0)),
            scratch_shapes=[
                pltpu.VMEM((row_tile, hd), jnp.float32),                  # acc slab
                pltpu.VMEM((num_heads, row_tile, 1), jnp.float32),        # running max
                pltpu.VMEM((num_heads, row_tile, 1), jnp.float32),        # running denom
            ],
        ),
        compiler_params=pltpu.CompilerParams(
            dimension_semantics=("parallel", "arbitrary"),
            vmem_limit_bytes=vmem_limit),
        cost_estimate=cost,
    )(q_all, k_all, res_all, adj_t_i8, gamma, beta, wout, bout)

    return out[:, :out_features]


# ----------------------------------------------------------------------------
# Pure-JAX f32 reference (same dense-mask math, adj[src, dst]) for a sanity check.
# ----------------------------------------------------------------------------
def reference(x, adj, params, *, num_heads, hidden):
    heads = []
    for h in range(num_heads):
        q = x @ params["wq"][h].T
        k = x @ params["wk"][h].T
        s = (q @ k.T) / math.sqrt(hidden)                 # s[src, dst]
        masked = jnp.where(adj > 0, s, -1e30)
        m = masked.max(axis=0, keepdims=True)
        p = jnp.exp(masked - m) * adj
        alpha = p / jnp.maximum(p.sum(axis=0, keepdims=True), 1e-30)
        o = alpha.T @ q + x @ params["wr_w"][h].T + params["wr_b"][h]
        heads.append(o)
    y = jnp.concatenate(heads, axis=1)
    mean = y.mean(-1, keepdims=True)
    var = ((y - mean) ** 2).mean(-1, keepdims=True)
    yn = (y - mean) / jnp.sqrt(var + 1e-5) * params["gamma"] + params["beta"]
    ys = yn * jax.nn.sigmoid(yn)
    z = ys + x @ params["w_res"].T + params["b_res"]
    return z @ params["w_out"].T + params["b_out"]


if __name__ == "__main__":
    # Small shapes consistent with the module's forward.
    N = 32            # num_nodes
    FIN = 16          # in_features
    HID = 32          # hidden_features (per head)
    HEADS = 4         # num_heads
    OUT = 8           # out_features (num classes)
    DCAT = HEADS * HID

    key = jax.random.PRNGKey(0)
    ks = jax.random.split(key, 10)

    x = jax.random.normal(ks[0], (N, FIN), jnp.float32)

    # edge_index: bidirectional ring + self loops, densified into adjacency masks.
    # adj[src, dst] (f32, reference) ; adj_t[dst, src] (int8, kernel).  Binary adjacency
    # (the kernel's `!= 0` mask matches the reference's `p * adj` only for 0/1 weights).
    idx = jnp.arange(N)
    src = jnp.concatenate([idx, idx, idx])
    dst = jnp.concatenate([(idx + 1) % N, (idx - 1) % N, idx])
    adj = jnp.zeros((N, N), jnp.float32).at[src, dst].set(1.0)
    adj_t = jnp.zeros((N, N), jnp.int8).at[dst, src].set(1)

    def init(k, shape, scale=0.1):
        return scale * jax.random.normal(k, shape, jnp.float32)

    params = {
        # per-head DotGATLayer parameters
        "wq":   init(ks[1], (HEADS, HID, FIN)),
        "wk":   init(ks[2], (HEADS, HID, FIN)),
        "wr_w": init(ks[3], (HEADS, HID, FIN)),     # per-head residual Linear weight
        "wr_b": init(ks[4], (HEADS, HID)),          # per-head residual Linear bias
        # LayerNorm
        "gamma": jnp.ones((DCAT,), jnp.float32),
        "beta":  jnp.zeros((DCAT,), jnp.float32),
        # main residual Linear (FIN -> DCAT) and output Linear (DCAT -> OUT)
        "w_res": init(ks[5], (DCAT, FIN)),
        "b_res": init(ks[6], (DCAT,)),
        "w_out": init(ks[7], (OUT, DCAT)),
        "b_out": init(ks[8], (OUT,)),
    }

    out = multi_head_dot_gat(x, adj_t, params,
                             num_heads=HEADS, hidden=HID, out_features=OUT)
    out = jax.block_until_ready(out)

    ref = reference(x, adj, params, num_heads=HEADS, hidden=HID)
    assert out.shape == (N, OUT)
    # bf16 MXU operands (projection / scores / aggregation) -> slightly looser tolerance
    assert jnp.allclose(out, ref, atol=2e-2, rtol=2e-2), "mismatch vs reference"

    print("KERNEL_OK")
</pallas_src>

<mosaic_0001>
module attributes {stable_mosaic.version = 11 : i64} {
  func.func @proj_kernel(%arg0: i32, %arg1: memref<32x16xbf16, #tpu.memory_space<vmem>>, %arg2: memref<16x256xbf16, #tpu.memory_space<vmem>>, %arg3: memref<16x256xbf16, #tpu.memory_space<vmem>>, %arg4: memref<1x256xf32, #tpu.memory_space<vmem>>, %arg5: memref<32x128xbf16, #tpu.memory_space<vmem>>, %arg6: memref<32x128xbf16, #tpu.memory_space<vmem>>, %arg7: memref<32x256xf32, #tpu.memory_space<vmem>>) attributes {dimension_semantics = [#tpu.dimension_semantics<parallel>], iteration_bounds = array<i64: 1>, scalar_prefetch = 0 : i64, scratch_operands = 0 : i64, tpu.core_type = #tpu.core_type<tc>, window_params = [{transform_indices = @transform_0, window_bounds = array<i64: 32, 16>}, {pipeline_mode = #tpu.pipeline_mode<synchronous>, transform_indices = @transform_1, window_bounds = array<i64: 16, 256>}, {pipeline_mode = #tpu.pipeline_mode<synchronous>, transform_indices = @transform_2, window_bounds = array<i64: 16, 256>}, {pipeline_mode = #tpu.pipeline_mode<synchronous>, transform_indices = @transform_3, window_bounds = array<i64: 1, 256>}, {transform_indices = @transform_4, window_bounds = array<i64: 32, 128>}, {transform_indices = @transform_5, window_bounds = array<i64: 32, 128>}, {transform_indices = @transform_6, window_bounds = array<i64: 32, 256>}]} {
    %c0 = arith.constant 0 : index
    %c0_0 = arith.constant 0 : index
    %0 = vector.load %arg1[%c0, %c0_0] : memref<32x16xbf16, #tpu.memory_space<vmem>>, vector<32x16xbf16>
    %c0_1 = arith.constant 0 : index
    %c0_2 = arith.constant 0 : index
    %1 = vector.load %arg2[%c0_1, %c0_2] : memref<16x256xbf16, #tpu.memory_space<vmem>>, vector<16x256xbf16>
    %cst = arith.constant dense<0.000000e+00> : vector<32x256xf32>
    %2 = tpu.matmul %0, %1, %cst {dimension_numbers = #tpu.dot_dimension_numbers<[1], [0], [0], [1], [0, 0, 1, 1], [], []>} : vector<32x16xbf16>, vector<16x256xbf16>, vector<32x256xf32> -> vector<32x256xf32>
    %3 = vector.extract_strided_slice %2 {offsets = [0, 0], sizes = [32, 128], strides = [1, 1]} : vector<32x256xf32> to vector<32x128xf32>
    %4 = arith.truncf %3 : vector<32x128xf32> to vector<32x128xbf16>
    %c0_3 = arith.constant 0 : index
    %c0_4 = arith.constant 0 : index
    %5 = vector.load %arg5[%c0_3, %c0_4] : memref<32x128xbf16, #tpu.memory_space<vmem>>, vector<32x128xbf16>
    tpu.vector_store %arg5[%c0_3, %c0_4], %4 {strides = array<i32>} : memref<32x128xbf16, #tpu.memory_space<vmem>>, vector<32x128xbf16>,
    %6 = vector.extract_strided_slice %2 {offsets = [0, 128], sizes = [32, 128], strides = [1, 1]} : vector<32x256xf32> to vector<32x128xf32>
    %7 = arith.truncf %6 : vector<32x128xf32> to vector<32x128xbf16>
    %c0_5 = arith.constant 0 : index
    %c0_6 = arith.constant 0 : index
    %8 = vector.load %arg6[%c0_5, %c0_6] : memref<32x128xbf16, #tpu.memory_space<vmem>>, vector<32x128xbf16>
    tpu.vector_store %arg6[%c0_5, %c0_6], %7 {strides = array<i32>} : memref<32x128xbf16, #tpu.memory_space<vmem>>, vector<32x128xbf16>,
    %c0_7 = arith.constant 0 : index
    %c0_8 = arith.constant 0 : index
    %9 = vector.load %arg3[%c0_7, %c0_8] : memref<16x256xbf16, #tpu.memory_space<vmem>>, vector<16x256xbf16>
    %cst_9 = arith.constant dense<0.000000e+00> : vector<32x256xf32>
    %10 = tpu.matmul %0, %9, %cst_9 {dimension_numbers = #tpu.dot_dimension_numbers<[1], [0], [0], [1], [0, 0, 1, 1], [], []>} : vector<32x16xbf16>, vector<16x256xbf16>, vector<32x256xf32> -> vector<32x256xf32>
    %c0_10 = arith.constant 0 : index
    %c0_11 = arith.constant 0 : index
    %11 = vector.load %arg4[%c0_10, %c0_11] : memref<1x256xf32, #tpu.memory_space<vmem>>, vector<1x256xf32>
    %12 = vector.broadcast %11 : vector<1x256xf32> to vector<32x256xf32>
    %13 = arith.addf %10, %12 : vector<32x256xf32>
    %c0_12 = arith.constant 0 : index
    %c0_13 = arith.constant 0 : index
    %14 = vector.load %arg7[%c0_12, %c0_13] : memref<32x256xf32, #tpu.memory_space<vmem>>, vector<32x256xf32>
    tpu.vector_store %arg7[%c0_12, %c0_13], %13 {strides = array<i32>} : memref<32x256xf32, #tpu.memory_space<vmem>>, vector<32x256xf32>,
    return
  }
  func.func @transform_0(%arg0: i32) -> (i32, i32) {
    %c0_i32 = arith.constant 0 : i32
    %c0_i32_0 = arith.constant 0 : i32
    return %arg0, %c0_i32 : i32, i32
  }
  func.func @transform_1(%arg0: i32) -> (i32, i32) {
    %c0_i32 = arith.constant 0 : i32
    %c0_i32_0 = arith.constant 0 : i32
    %c0_i32_1 = arith.constant 0 : i32
    return %c0_i32, %c0_i32_0 : i32, i32
  }
  func.func @transform_2(%arg0: i32) -> (i32, i32) {
    %c0_i32 = arith.constant 0 : i32
    %c0_i32_0 = arith.constant 0 : i32
    %c0_i32_1 = arith.constant 0 : i32
    return %c0_i32, %c0_i32_0 : i32, i32
  }
  func.func @transform_3(%arg0: i32) -> (i32, i32) {
    %c0_i32 = arith.constant 0 : i32
    %c0_i32_0 = arith.constant 0 : i32
    %c0_i32_1 = arith.constant 0 : i32
    return %c0_i32, %c0_i32_0 : i32, i32
  }
  func.func @transform_4(%arg0: i32) -> (i32, i32) {
    %c0_i32 = arith.constant 0 : i32
    %c0_i32_0 = arith.constant 0 : i32
    return %arg0, %c0_i32 : i32, i32
  }
  func.func @transform_5(%arg0: i32) -> (i32, i32) {
    %c0_i32 = arith.constant 0 : i32
    %c0_i32_0 = arith.constant 0 : i32
    return %arg0, %c0_i32 : i32, i32
  }
  func.func @transform_6(%arg0: i32) -> (i32, i32) {
    %c0_i32 = arith.constant 0 : i32
    %c0_i32_0 = arith.constant 0 : i32
    return %arg0, %c0_i32 : i32, i32
  }
}

</mosaic_0001>

<bundles_post_ra>
// kernel: tpu_custom_call.1
= control target key start
LH: loop header
LB: loop body
LE: loop exit
PB: predicated region body
PF: predicated region fallthrough
CT: control target
= control target key end

     0   :  { %12 = vsyncpa [#allocation3], 0  ;;  %s580_s0 = inlined_call_operand.vmem [shape: bf16[32,16], index: 0, kind: input, shape index: {}]   ;;  %s581_s1 = inlined_call_operand.vmem [shape: bf16[16,256], index: 1, kind: input, shape index: {}]   ;;  %s582_s2 = inlined_call_operand.hbm [shape: bf16[16,256], index: 2, kind: input, shape index: {}]   ;;  %s583_s3 = inlined_call_operand.vmem [shape: f32[1,256], index: 3, kind: input, shape index: {}]   ;;  %s584_s4 = inlined_call_operand.hbm [shape: bf16[32,128], index: 4, kind: output, shape index: {0}]   ;;  %s585_s5 = inlined_call_operand.hbm [shape: bf16[32,128], index: 5, kind: output, shape index: {1}]   ;;  %s586_s6 = inlined_call_operand.hbm [shape: f32[32,256], index: 6, kind: output, shape index: {2}]  }
   0x1   :  { %13 = vsyncpa [#allocation4], 0 }
   0x2   :  { %14 = vsyncpa [#allocation7], 0  ;;  %s457_s21 = smov [#allocation2]   ;;  %s363_s25 = scalar_lea.hbm %s582_s2, 256 }
   0x3   :  { %s24_s22 = sshll.u32 %s457_s21, 4  ;;  %p364_p0 = scmp.ne.s32.totalorder %s582_s2, %s363_s25  ;;  %s25_s22 = int_to_ptr.vmem [resolvable:$true] %s24_s22 }
   0x4   :  { %p367_p1 = scmp.lt.u32.totalorder %s363_s25, %s582_s2 }
   0x6   :  { %p369_p2 = pnand %p367_p1, %p364_p0 }
   0x8   :  { %372 = shalt.err (!%p369_p2)
}
   0x9   :  { %s373_s30 = scalar_lea.vmem %s25_s22, 256  ;;  %p378_p4 = scmp.lt.s32.totalorder %s25_s22, %s25_s22 }
   0xa   :  { %p374_p3 = scmp.ne.s32.totalorder %s25_s22, %s373_s30  ;;  %p379_p5 = scmp.lt.s32.totalorder %s373_s30, %s373_s30 }
   0xc   :  { %p380_p6 = por %p379_p5, %p378_p4 }
   0xe   :  { %p381_p7 = pnand %p380_p6, %p374_p3 }
  0x10   :  { %384 = shalt.err (!%p381_p7)
}
  0x11   :  { %s458_s7 = smov 128   ;;  %s459_s8 = smov 8  }
  0x12   :  { %30 = dma.hbm_to_vmem [thread:$0]  %s582_s2, 256, %s25_s22, [#allocation3], %s458_s7, %s458_s7, %s459_s8  }
  0x13   :  { %451 = dma.done.wait [#allocation3], 256  }
  0x14   :  { %452 = vsyncadd [#allocation3], 4294967040  ;;  %v460_v0 = vmov 0   ;;  %v355_v1 = vld [vmem:[%s581_s1 + $0x4] ss:$8 sps:$4 sm:$0xff]   ;;  %vm63_vm0 = vcmask 130048   ;;  %v167_v7 = vlaneseq }
  0x15   :  { %102 = vmatprep.mubr.bf16.mxu0 %v460_v0  ;;  %219 = vmatprep.mubr.bf16.mxu1 %v460_v0  ;;  %v357_v2 = vld [vmem:[#allocation2 + $0x4] ss:$8 sps:$4 sm:$0xff]   ;;  %v359_v3 = vld [vmem:[%s581_s1] ss:$8 sps:$4 sm:$0xff]   ;;  %s462_s19 = smov [#allocation6]   ;;  %s463_s21 = smov [#allocation8]  }
  0x16   :  { %70 = vmatprep.subr.bf16.mxu0 %v355_v1  ;;  %v360_v4 = vld [vmem:[#allocation2] ss:$8 sps:$4 sm:$0xff]   ;;  %187 = vmatprep.subr.bf16.mxu1 %v357_v2  ;;  %v168_v8 = vshrl.u32 %v167_v7, 7  ;;  %s265_s20 = sshll.u32 %s462_s19, 4  ;;  %s277_s22 = sshll.u32 %s463_s21, 4  ;;  %s530_s20 = int_to_ptr.vmem [resolvable:$true] %s265_s20  ;;  %s532_s22 = int_to_ptr.vmem [resolvable:$true] %s277_s22 }
  0x17   :  { %v361_v5 = vld [vmem:[%s580_s0] sm:$0xff]   ;;  %71 = vmatpush1.bf16.msra.mxu0 %v359_v3  ;;  %188 = vmatpush1.bf16.msra.mxu1 %v360_v4  ;;  %v362_v6 = vld [vmem:[%s580_s0 + $0x8] sm:$0xff]   ;;  %s461_s0 = smov [#allocation5]  }
  0x18   :  { %v169_v9 = vsub.s32 0, %v168_v8  ;;  %v165_v10 = vld [vmem:[%s583_s3] sm:$0x3]  ;;  %v173_v11 = vsub.s32 1, %v168_v8  ;;  %s253_s3 = sshll.u32 %s461_s0, 4  ;;  %s254_s3 = int_to_ptr.vmem [resolvable:$true] %s253_s3 }
  0x19   :  { %s385_s23 = scalar_lea.vmem %s254_s3, 256  ;;  %p390_p9 = scmp.lt.s32.totalorder %s254_s3, %s254_s3 }
  0x1a   :  { %300 = vmatmul.mubr.msk.bf16.vlgmr.msra.gmra.mrb[0].mxu0 %vm63_vm0, %v361_v5  ;;  %312 = vmatmul.mubr.msk.bf16.vlgmr.msra.gmra.mrb[0].mxu1 %vm63_vm0, %v361_v5  ;;  %v170_v12 = vrot.slane %v165_v10, %v169_v9  ;;  %v174_v13 = vrot.slane %v165_v10, %v173_v11  ;;  %p386_p8 = scmp.ne.s32.totalorder %s254_s3, %s385_s23  ;;  %p391_p10 = scmp.lt.s32.totalorder %s385_s23, %s385_s23 }
  0x1b   :  { %112 = vmatprep.mubr.bf16.mxu0 %v460_v0  ;;  %229 = vmatprep.mubr.bf16.mxu1 %v460_v0 }
  0x1c   :  { %p392_p11 = por %p391_p10, %p390_p9 }
  0x1e   :  { %p393_p12 = pnand %p392_p11, %p386_p8 }
  0x22   :  { %301 = vmatmul.mubr.msk.bf16.gmra.mrb[4].mxu0 %vm63_vm0, %v362_v6  ;;  %313 = vmatmul.mubr.msk.bf16.gmra.mrb[4].mxu1 %vm63_vm0, %v362_v6 }
  0xed   :  { %v104_v14 = vpop.f32.mrb[0].mxu0  ;;  %v221_v15 = vpop.f32.mrb[0].mxu1 }
  0xee   :  { %v222_v16 = vadd.f32 %v221_v15, %v170_v12  ;;  %v106_v17 = vpop.f32.mrb[1].mxu0  ;;  %v223_v18 = vpop.f32.mrb[1].mxu1 }
  0xef   :  { %v224_v19 = vadd.f32 %v223_v18, %v174_v13  ;;  %v108_v20 = vpop.f32.mrb[2].mxu0  ;;  %v225_v21 = vpop.f32.mrb[2].mxu1 }
  0xf0   :  { %240 = vst [vmem:[#allocation8] sm:$0xff] %v222_v16  ;;  %v325_v22 = vpack.c.bf16 %v108_v20, %v104_v14  ;;  %v226_v23 = vadd.f32 %v225_v21, %v170_v12  ;;  %v110_v24 = vpop.f32.mrb[3].mxu0  ;;  %v227_v25 = vpop.f32.mrb[3].mxu1 }
  0xf1   :  { %241 = vst [vmem:[#allocation8 + $0x8] sm:$0xff] %v224_v19  ;;  %v335_v26 = vpack.c.bf16 %v110_v24, %v106_v17  ;;  %v228_v27 = vadd.f32 %v227_v25, %v174_v13 }
  0xf2   :  { %326 = vst [vmem:[#allocation5] sm:$0xff] %v325_v22   ;;  %242 = vst [vmem:[#allocation8 + $0x10] sm:$0xff] %v226_v23 }
  0xf3   :  { %336 = vst [vmem:[#allocation6] sm:$0xff] %v335_v26   ;;  %243 = vst [vmem:[#allocation8 + $0x18] sm:$0xff] %v228_v27 }
  0xf5   :  { %v114_v28 = vpop.f32.mrb[4].mxu0  ;;  %v231_v29 = vpop.f32.mrb[4].mxu1 }
  0xf6   :  { %v232_v30 = vadd.f32 %v231_v29, %v170_v12  ;;  %v116_v31 = vpop.f32.mrb[5].mxu0  ;;  %v233_v32 = vpop.f32.mrb[5].mxu1 }
  0xf7   :  { %v234_v33 = vadd.f32 %v233_v32, %v174_v13  ;;  %v118_v34 = vpop.f32.mrb[6].mxu0  ;;  %v235_v35 = vpop.f32.mrb[6].mxu1 }
  0xf8   :  { %244 = vst [vmem:[#allocation8 + $0x20] sm:$0xff] %v232_v30  ;;  %v330_v36 = vpack.c.bf16 %v118_v34, %v114_v28  ;;  %v236_v37 = vadd.f32 %v235_v35, %v170_v12  ;;  %v120_v38 = vpop.f32.mrb[7].mxu0  ;;  %v237_v39 = vpop.f32.mrb[7].mxu1 }
  0xf9   :  { %245 = vst [vmem:[#allocation8 + $0x28] sm:$0xff] %v234_v33  ;;  %v340_v40 = vpack.c.bf16 %v120_v38, %v116_v31  ;;  %v238_v41 = vadd.f32 %v237_v39, %v174_v13 }
  0xfa   :  { %342 = vst [vmem:[#allocation5 + $0x8] sm:$0xff] %v330_v36   ;;  %246 = vst [vmem:[#allocation8 + $0x30] sm:$0xff] %v236_v37 }
  0xfb   :  { %343 = vst [vmem:[#allocation6 + $0x8] sm:$0xff] %v340_v40   ;;  %247 = vst [vmem:[#allocation8 + $0x38] sm:$0xff] %v238_v41 }
  0xfc   :  { %396 = shalt.err (!%p393_p12)
}
  0xfd   :  { %s397_s26 = scalar_lea.hbm %s584_s4, 256 }
  0xfe   :  { %p398_p13 = scmp.ne.s32.totalorder %s584_s4, %s397_s26  ;;  %p401_p0 = scmp.lt.u32.totalorder %s397_s26, %s584_s4 }
 0x100   :  { %p403_p1 = pnand %p401_p0, %p398_p13 }
 0x102   :  { %406 = shalt.err (!%p403_p1)
}
 0x103   :  { %s464_s7 = smov 64   ;;  %s465_s8 = smov 4  }
 0x104   :  { %259 = dma.vmem_to_hbm [thread:$0]  %s254_s3, 256, %s584_s4, [#allocation4], %s464_s7, %s464_s7, %s465_s8  }
 0x105   :  { %s407_s11 = scalar_lea.vmem %s530_s20, 256  ;;  %p412_p3 = scmp.lt.s32.totalorder %s530_s20, %s530_s20 }
 0x106   :  { %p408_p2 = scmp.ne.s32.totalorder %s530_s20, %s407_s11  ;;  %p413_p4 = scmp.lt.s32.totalorder %s407_s11, %s407_s11 }
 0x108   :  { %p414_p5 = por %p413_p4, %p412_p3 }
 0x10a   :  { %p415_p6 = pnand %p414_p5, %p408_p2 }
 0x10c   :  { %418 = shalt.err (!%p415_p6)
}
 0x10d   :  { %s419_s14 = scalar_lea.hbm %s585_s5, 256 }
 0x10e   :  { %p420_p7 = scmp.ne.s32.totalorder %s585_s5, %s419_s14  ;;  %p423_p8 = scmp.lt.u32.totalorder %s419_s14, %s585_s5 }
 0x110   :  { %p425_p9 = pnand %p423_p8, %p420_p7 }
 0x112   :  { %428 = shalt.err (!%p425_p9)
}
 0x113   :  { %271 = dma.vmem_to_hbm [thread:$0]  %s530_s20, 256, %s585_s5, [#allocation7], %s464_s7, %s464_s7, %s465_s8  }
 0x114   :  { %s429_s18 = scalar_lea.vmem %s532_s22, 1024  ;;  %p434_p11 = scmp.lt.s32.totalorder %s532_s22, %s532_s22 }
 0x115   :  { %p430_p10 = scmp.ne.s32.totalorder %s532_s22, %s429_s18  ;;  %p435_p12 = scmp.lt.s32.totalorder %s429_s18, %s429_s18 }
 0x117   :  { %p436_p13 = por %p435_p12, %p434_p11 }
 0x119   :  { %p437_p0 = pnand %p436_p13, %p430_p10 }
 0x11b   :  { %440 = shalt.err (!%p437_p0)
}
 0x11c   :  { %s441_s19 = scalar_lea.hbm %s586_s6, 1024 }
 0x11d   :  { %p442_p1 = scmp.ne.s32.totalorder %s586_s6, %s441_s19  ;;  %p445_p2 = scmp.lt.u32.totalorder %s441_s19, %s586_s6 }
 0x11f   :  { %p447_p3 = pnand %p445_p2, %p442_p1 }
 0x121   :  { %450 = shalt.err (!%p447_p3)
}
 0x122   :  { %s466_s5 = smov 256   ;;  %s467_s20 = smov 16  }
 0x123   :  { %283 = dma.vmem_to_hbm [thread:$0]  %s532_s22, 1024, %s586_s6, [#allocation7], %s466_s5, %s466_s5, %s467_s20  }
 0x124   :  { %453 = dma.done.wait [#allocation4], 256  }
 0x125   :  { %454 = vsyncadd [#allocation4], 4294967040 }
 0x126   :  { %455 = dma.done.wait [#allocation7], 1280  }
 0x127   :  { %456 = vsyncadd [#allocation7], 4294966016 }
 0x128   :  { %293 = vsyncpa [#allocation3], 1 }
 0x129   :  { %294 = vsyncpa [#allocation4], 1 }
 0x12a   :  { %295 = vsyncpa [#allocation7], 1 }

</bundles_post_ra>
